<compile_context>
chip_gen: v5e
topology: v5e:2x2
jax: 0.10.0
libtpu: 0.0.40
codegen_flags: <defaults>
</compile_context>

<pallas_src>
import functools

import jax
import jax.numpy as jnp
from jax.experimental import pallas as pl
from jax.experimental.pallas import tpu as pltpu

_INV_SQRT2 = 0.7071067811865476  # python float literal, never a captured jax const


def _round_up(a, b):
    return (a + b - 1) // b * b


def bert_token_head_kernel(x_ref, w1_ref, b1_ref, gamma_ref, beta_ref,
                           w2_ref, b2_ref, out_ref, h_ref, *, eps):
    j = pl.program_id(1)

    # Encoder half (dense -> gelu -> LayerNorm) runs once per row tile (j == 0)
    # and is cached in VMEM scratch, then reused for every decoder column tile.
    @pl.when(j == 0)
    def _():
        # x arrives as f32 straight from HBM; cast to the matmul dtype in VMEM.
        x = x_ref[...].astype(w1_ref.dtype)

        # ---- dense: bf16 [tm, D_in] @ bf16 [D_in, H], f32 accumulate (MXU) ----
        h = jnp.dot(x, w1_ref[...], preferred_element_type=jnp.float32) + b1_ref[...]

        # ---- gelu (exact, erf-based, BERT ACT2FN["gelu"]); f32 on VPU/EUP ----
        h = 0.5 * h * (1.0 + jax.lax.erf(h * _INV_SQRT2))

        # ---- LayerNorm over the hidden axis (f32) ----
        mean = jnp.mean(h, axis=-1, keepdims=True)
        centered = h - mean
        var = jnp.mean(centered * centered, axis=-1, keepdims=True)
        h = centered * jax.lax.rsqrt(var + eps) * gamma_ref[...] + beta_ref[...]

        h_ref[...] = h.astype(h_ref.dtype)

    # ---- decoder column tile: bf16 MXU matmul with f32 accumulation,
    #      lane-dense (multiple-of-128) unmasked stores ----
    y = jnp.dot(h_ref[...], w2_ref[...],
                preferred_element_type=jnp.float32) + b2_ref[...]
    out_ref[...] = y.astype(out_ref.dtype)


def _vmem_limit_bytes():
    # Generation-aware VMEM budget: ~85% of physical capacity
    # (v5e/v6e: 128 MiB -> ~108 MiB; v7x: 64 MiB -> ~54 MiB).
    cap = 64 * 1024 * 1024
    try:
        cap = int(pltpu.get_tpu_info().vmem_capacity_bytes)
    except Exception:
        pass
    return max(32 * 1024 * 1024, int(cap * 0.85))


def bert_token_head(x, params, *, eps=1e-12, tm=512, tn=2048,
                    matmul_dtype=jnp.bfloat16):
    """x: [batch, seq, input_size] -> [batch, seq, num_classes] (f32)."""
    w1, b1, gamma, beta, w2, b2 = params
    B, S, D_in = x.shape
    H = w1.shape[1]
    C = w2.shape[1]
    M = B * S

    LANE = 128
    # Row tile: clamp to the (sublane-rounded) problem size, keep >= 8.
    # Note: on v7x keep M_pad // tm_eff >= 2 for large M so the "parallel"
    # row axis can shard across both TensorCores.
    tm_eff = max(8, min(tm, _round_up(M, 8)))
    M_pad = _round_up(M, tm_eff)
    # Decoder column tile: lane-dense multiple of 128.  Column tiling bounds
    # the resident w2 + out-block VMEM independently of C (vocab-scale safe).
    C_lane = _round_up(C, LANE)
    tn_eff = min(_round_up(tn, LANE), C_lane)
    C_pad = _round_up(C_lane, tn_eff)
    n_row = M_pad // tm_eff
    n_col = C_pad // tn_eff

    x2 = x.reshape(M, D_in)                      # stays f32; cast happens in-kernel
    if M_pad != M:
        x2 = jnp.pad(x2, ((0, M_pad - M), (0, 0)))

    w1c = w1.astype(matmul_dtype)
    w2c = jnp.pad(w2, ((0, 0), (0, C_pad - C))).astype(matmul_dtype)
    b1c = b1.reshape(1, H).astype(jnp.float32)
    gammac = gamma.reshape(1, H).astype(jnp.float32)
    betac = beta.reshape(1, H).astype(jnp.float32)
    b2c = jnp.pad(b2.reshape(1, C), ((0, 0), (0, C_pad - C))).astype(jnp.float32)

    kernel = functools.partial(bert_token_head_kernel, eps=float(eps))

    wsize = jnp.dtype(matmul_dtype).itemsize
    cost = pl.CostEstimate(
        flops=2 * M_pad * D_in * H + 2 * M_pad * H * C_pad,
        transcendentals=M_pad * H,
        bytes_accessed=(M_pad * D_in * 4            # x (f32)
                        + D_in * H * wsize          # w1
                        + H * C_pad * wsize         # w2
                        + M_pad * C_pad * 4),       # out (f32)
    )

    def build(use_buffered):
        def spec(shape, idx, resident):
            # Grid-invariant operands: single-buffered (no wasted 2nd buffer).
            if use_buffered and resident:
                return pl.BlockSpec(shape, idx, pipeline_mode=pl.Buffered(1))
            return pl.BlockSpec(shape, idx)

        in_specs = [
            # x rows (f32): reused across all column tiles of the same row tile.
            pl.BlockSpec((tm_eff, D_in), lambda i, j: (i, 0)),
            spec((D_in, H), lambda i, j: (0, 0), True),        # dense weight
            spec((1, H),    lambda i, j: (0, 0), True),        # dense bias
            spec((1, H),    lambda i, j: (0, 0), True),        # LN gamma
            spec((1, H),    lambda i, j: (0, 0), True),        # LN beta
            # Decoder weight/bias: column-tiled; resident only when n_col == 1.
            spec((H, tn_eff), lambda i, j: (0, j), n_col == 1),
            spec((1, tn_eff), lambda i, j: (0, j), n_col == 1),
        ]
        return pl.pallas_call(
            kernel,
            out_shape=jax.ShapeDtypeStruct((M_pad, C_pad), jnp.float32),
            grid_spec=pltpu.PrefetchScalarGridSpec(
                num_scalar_prefetch=0,
                grid=(n_row, n_col),                 # col axis innermost
                in_specs=in_specs,
                out_specs=pl.BlockSpec((tm_eff, tn_eff), lambda i, j: (i, j)),
                scratch_shapes=[pltpu.VMEM((tm_eff, H), matmul_dtype)],
            ),
            compiler_params=pltpu.CompilerParams(
                dimension_semantics=("parallel", "arbitrary"),
                vmem_limit_bytes=_vmem_limit_bytes(),
            ),
            cost_estimate=cost,
        )

    try:
        out2 = build(True)(x2, w1c, b1c, gammac, betac, w2c, b2c)
    except Exception:
        # Fallback: identical kernel without the single-buffer hint.
        out2 = build(False)(x2, w1c, b1c, gammac, betac, w2c, b2c)

    return out2[:M, :C].reshape(B, S, C)


def init_params(key, input_size, hidden_size, num_classes):
    k1, k2, k3, k4 = jax.random.split(key, 4)
    scale1 = 1.0 / jnp.sqrt(input_size)
    scale2 = 1.0 / jnp.sqrt(hidden_size)
    w1 = jax.random.uniform(k1, (input_size, hidden_size), jnp.float32,
                            -scale1, scale1)
    b1 = jax.random.uniform(k2, (1, hidden_size), jnp.float32, -scale1, scale1)
    gamma = jnp.ones((1, hidden_size), jnp.float32)
    beta = jnp.zeros((1, hidden_size), jnp.float32)
    w2 = jax.random.uniform(k3, (hidden_size, num_classes), jnp.float32,
                            -scale2, scale2)
    b2 = jax.random.uniform(k4, (1, num_classes), jnp.float32, -scale2, scale2)
    return (w1, b1, gamma, beta, w2, b2)


if __name__ == "__main__":
    batch, seq = 2, 8
    input_size = 32
    hidden_size = 32
    num_classes = 2

    key = jax.random.PRNGKey(0)
    kx, kp = jax.random.split(key)
    x = jax.random.normal(kx, (batch, seq, input_size), jnp.float32)
    params = init_params(kp, input_size, hidden_size, num_classes)

    out = bert_token_head(x, params, eps=1e-12)
    out = jax.block_until_ready(out)

    # Pure-JAX reference (same bf16 rounding of matmul inputs, f32 accumulate).
    # NOTE: bf16 MXU inputs deviate slightly from a pure-f32 PyTorch forward;
    # fine for inference at ~1e-2 tolerance.
    w1, b1, gamma, beta, w2, b2 = params
    xq = x.reshape(-1, input_size).astype(jnp.bfloat16).astype(jnp.float32)
    w1q = w1.astype(jnp.bfloat16).astype(jnp.float32)
    w2q = w2.astype(jnp.bfloat16).astype(jnp.float32)
    h_ref = xq @ w1q + b1
    h_ref = 0.5 * h_ref * (1.0 + jax.lax.erf(h_ref * _INV_SQRT2))
    mu = h_ref.mean(-1, keepdims=True)
    var = ((h_ref - mu) ** 2).mean(-1, keepdims=True)
    h_ref = (h_ref - mu) * jax.lax.rsqrt(var + 1e-12) * gamma + beta
    h_ref = h_ref.astype(jnp.bfloat16).astype(jnp.float32)
    ref = (h_ref @ w2q + b2).reshape(batch, seq, num_classes)

    assert out.shape == (batch, seq, num_classes)
    assert jnp.allclose(out, ref, atol=1e-2, rtol=1e-2), "mismatch vs reference"

    print("KERNEL_OK")
</pallas_src>

<mosaic_0001>
module attributes {stable_mosaic.version = 11 : i64} {
  func.func @bert_token_head_kernel(%arg0: i32, %arg1: i32, %arg2: memref<16x32xf32, #tpu.memory_space<vmem>>, %arg3: memref<32x32xbf16, #tpu.memory_space<vmem>>, %arg4: memref<1x32xf32, #tpu.memory_space<vmem>>, %arg5: memref<1x32xf32, #tpu.memory_space<vmem>>, %arg6: memref<1x32xf32, #tpu.memory_space<vmem>>, %arg7: memref<32x128xbf16, #tpu.memory_space<vmem>>, %arg8: memref<1x128xf32, #tpu.memory_space<vmem>>, %arg9: memref<16x128xf32, #tpu.memory_space<vmem>>, %arg10: memref<16x32xbf16, #tpu.memory_space<vmem>>) attributes {dimension_semantics = [#tpu.dimension_semantics<parallel>, #tpu.dimension_semantics<arbitrary>], iteration_bounds = array<i64: 1, 1>, scalar_prefetch = 0 : i64, scratch_operands = 1 : i64, tpu.core_type = #tpu.core_type<tc>, window_params = [{transform_indices = @transform_0, window_bounds = array<i64: 16, 32>}, {pipeline_mode = #tpu.pipeline_mode<synchronous>, transform_indices = @transform_1, window_bounds = array<i64: 32, 32>}, {pipeline_mode = #tpu.pipeline_mode<synchronous>, transform_indices = @transform_2, window_bounds = array<i64: 1, 32>}, {pipeline_mode = #tpu.pipeline_mode<synchronous>, transform_indices = @transform_3, window_bounds = array<i64: 1, 32>}, {pipeline_mode = #tpu.pipeline_mode<synchronous>, transform_indices = @transform_4, window_bounds = array<i64: 1, 32>}, {pipeline_mode = #tpu.pipeline_mode<synchronous>, transform_indices = @transform_5, window_bounds = array<i64: 32, 128>}, {pipeline_mode = #tpu.pipeline_mode<synchronous>, transform_indices = @transform_6, window_bounds = array<i64: 1, 128>}, {transform_indices = @transform_7, window_bounds = array<i64: 16, 128>}]} {
    %c0_i32 = arith.constant 0 : i32
    %0 = arith.cmpi eq, %arg1, %c0_i32 : i32
    %1 = arith.extui %0 : i1 to i32
    %c0_i32_0 = arith.constant 0 : i32
    %2 = arith.cmpi ne, %1, %c0_i32_0 : i32
    scf.if %2 {
      %c0_8 = arith.constant 0 : index
      %c0_9 = arith.constant 0 : index
      %10 = vector.load %arg2[%c0_8, %c0_9] : memref<16x32xf32, #tpu.memory_space<vmem>>, vector<16x32xf32>
      %11 = arith.truncf %10 : vector<16x32xf32> to vector<16x32xbf16>
      %c0_10 = arith.constant 0 : index
      %c0_11 = arith.constant 0 : index
      %12 = vector.load %arg3[%c0_10, %c0_11] : memref<32x32xbf16, #tpu.memory_space<vmem>>, vector<32x32xbf16>
      %cst_12 = arith.constant dense<0.000000e+00> : vector<16x32xf32>
      %13 = tpu.matmul %11, %12, %cst_12 {dimension_numbers = #tpu.dot_dimension_numbers<[1], [0], [0], [1], [0, 0, 1, 1], [], []>} : vector<16x32xbf16>, vector<32x32xbf16>, vector<16x32xf32> -> vector<16x32xf32>
      %c0_13 = arith.constant 0 : index
      %c0_14 = arith.constant 0 : index
      %14 = vector.load %arg4[%c0_13, %c0_14] : memref<1x32xf32, #tpu.memory_space<vmem>>, vector<1x32xf32>
      %15 = vector.broadcast %14 : vector<1x32xf32> to vector<16x32xf32>
      %16 = arith.addf %13, %15 : vector<16x32xf32>
      %cst_15 = arith.constant 5.000000e-01 : f32
      %17 = vector.broadcast %cst_15 : f32 to vector<16x32xf32>
      %18 = arith.mulf %17, %16 : vector<16x32xf32>
      %cst_16 = arith.constant 0.707106769 : f32
      %19 = vector.broadcast %cst_16 : f32 to vector<16x32xf32>
      %20 = arith.mulf %16, %19 : vector<16x32xf32>
      %21 = math.erf %20 : vector<16x32xf32>
      %cst_17 = arith.constant 1.000000e+00 : f32
      %22 = vector.broadcast %cst_17 : f32 to vector<16x32xf32>
      %23 = arith.addf %22, %21 : vector<16x32xf32>
      %24 = arith.mulf %18, %23 : vector<16x32xf32>
      %cst_18 = arith.constant dense<0.000000e+00> : vector<16xf32>
      %25 = vector.multi_reduction <add>, %24, %cst_18 [1] : vector<16x32xf32> to vector<16xf32>
      %26 = vector.shape_cast %25 : vector<16xf32> to vector<16x1xf32>
      %cst_19 = arith.constant 3.200000e+01 : f32
      %27 = vector.broadcast %cst_19 : f32 to vector<16x1xf32>
      %28 = arith.divf %26, %27 : vector<16x1xf32>
      %29 = vector.broadcast %28 : vector<16x1xf32> to vector<16x32xf32>
      %30 = arith.subf %24, %29 : vector<16x32xf32>
      %31 = arith.mulf %30, %30 : vector<16x32xf32>
      %cst_20 = arith.constant dense<0.000000e+00> : vector<16xf32>
      %32 = vector.multi_reduction <add>, %31, %cst_20 [1] : vector<16x32xf32> to vector<16xf32>
      %33 = vector.shape_cast %32 : vector<16xf32> to vector<16x1xf32>
      %cst_21 = arith.constant 3.200000e+01 : f32
      %34 = vector.broadcast %cst_21 : f32 to vector<16x1xf32>
      %35 = arith.divf %33, %34 : vector<16x1xf32>
      %cst_22 = arith.constant 9.99999996E-13 : f32
      %36 = vector.broadcast %cst_22 : f32 to vector<16x1xf32>
      %37 = arith.addf %35, %36 : vector<16x1xf32>
      %38 = math.rsqrt %37 : vector<16x1xf32>
      %39 = vector.broadcast %38 : vector<16x1xf32> to vector<16x32xf32>
      %40 = arith.mulf %30, %39 : vector<16x32xf32>
      %c0_23 = arith.constant 0 : index
      %c0_24 = arith.constant 0 : index
      %41 = vector.load %arg5[%c0_23, %c0_24] : memref<1x32xf32, #tpu.memory_space<vmem>>, vector<1x32xf32>
      %42 = vector.broadcast %41 : vector<1x32xf32> to vector<16x32xf32>
      %43 = arith.mulf %40, %42 : vector<16x32xf32>
      %c0_25 = arith.constant 0 : index
      %c0_26 = arith.constant 0 : index
      %44 = vector.load %arg6[%c0_25, %c0_26] : memref<1x32xf32, #tpu.memory_space<vmem>>, vector<1x32xf32>
      %45 = vector.broadcast %44 : vector<1x32xf32> to vector<16x32xf32>
      %46 = arith.addf %43, %45 : vector<16x32xf32>
      %47 = arith.truncf %46 : vector<16x32xf32> to vector<16x32xbf16>
      %c0_27 = arith.constant 0 : index
      %c0_28 = arith.constant 0 : index
      %48 = vector.load %arg10[%c0_27, %c0_28] : memref<16x32xbf16, #tpu.memory_space<vmem>>, vector<16x32xbf16>
      tpu.vector_store %arg10[%c0_27, %c0_28], %47 {strides = array<i32>} : memref<16x32xbf16, #tpu.memory_space<vmem>>, vector<16x32xbf16>,
    } else {
    }
    %c0 = arith.constant 0 : index
    %c0_1 = arith.constant 0 : index
    %3 = vector.load %arg10[%c0, %c0_1] : memref<16x32xbf16, #tpu.memory_space<vmem>>, vector<16x32xbf16>
    %c0_2 = arith.constant 0 : index
    %c0_3 = arith.constant 0 : index
    %4 = vector.load %arg7[%c0_2, %c0_3] : memref<32x128xbf16, #tpu.memory_space<vmem>>, vector<32x128xbf16>
    %cst = arith.constant dense<0.000000e+00> : vector<16x128xf32>
    %5 = tpu.matmul %3, %4, %cst {dimension_numbers = #tpu.dot_dimension_numbers<[1], [0], [0], [1], [0, 0, 1, 1], [], []>} : vector<16x32xbf16>, vector<32x128xbf16>, vector<16x128xf32> -> vector<16x128xf32>
    %c0_4 = arith.constant 0 : index
    %c0_5 = arith.constant 0 : index
    %6 = vector.load %arg8[%c0_4, %c0_5] : memref<1x128xf32, #tpu.memory_space<vmem>>, vector<1x128xf32>
    %7 = vector.broadcast %6 : vector<1x128xf32> to vector<16x128xf32>
    %8 = arith.addf %5, %7 : vector<16x128xf32>
    %c0_6 = arith.constant 0 : index
    %c0_7 = arith.constant 0 : index
    %9 = vector.load %arg9[%c0_6, %c0_7] : memref<16x128xf32, #tpu.memory_space<vmem>>, vector<16x128xf32>
    tpu.vector_store %arg9[%c0_6, %c0_7], %8 {strides = array<i32>} : memref<16x128xf32, #tpu.memory_space<vmem>>, vector<16x128xf32>,
    return
  }
  func.func @transform_0(%arg0: i32, %arg1: i32) -> (i32, i32) {
    %c0_i32 = arith.constant 0 : i32
    %c0_i32_0 = arith.constant 0 : i32
    return %arg0, %c0_i32 : i32, i32
  }
  func.func @transform_1(%arg0: i32, %arg1: i32) -> (i32, i32) {
    %c0_i32 = arith.constant 0 : i32
    %c0_i32_0 = arith.constant 0 : i32
    %c0_i32_1 = arith.constant 0 : i32
    return %c0_i32, %c0_i32_0 : i32, i32
  }
  func.func @transform_2(%arg0: i32, %arg1: i32) -> (i32, i32) {
    %c0_i32 = arith.constant 0 : i32
    %c0_i32_0 = arith.constant 0 : i32
    %c0_i32_1 = arith.constant 0 : i32
    return %c0_i32, %c0_i32_0 : i32, i32
  }
  func.func @transform_3(%arg0: i32, %arg1: i32) -> (i32, i32) {
    %c0_i32 = arith.constant 0 : i32
    %c0_i32_0 = arith.constant 0 : i32
    %c0_i32_1 = arith.constant 0 : i32
    return %c0_i32, %c0_i32_0 : i32, i32
  }
  func.func @transform_4(%arg0: i32, %arg1: i32) -> (i32, i32) {
    %c0_i32 = arith.constant 0 : i32
    %c0_i32_0 = arith.constant 0 : i32
    %c0_i32_1 = arith.constant 0 : i32
    return %c0_i32, %c0_i32_0 : i32, i32
  }
  func.func @transform_5(%arg0: i32, %arg1: i32) -> (i32, i32) {
    %c0_i32 = arith.constant 0 : i32
    %c0_i32_0 = arith.constant 0 : i32
    return %c0_i32, %arg1 : i32, i32
  }
  func.func @transform_6(%arg0: i32, %arg1: i32) -> (i32, i32) {
    %c0_i32 = arith.constant 0 : i32
    %c0_i32_0 = arith.constant 0 : i32
    return %c0_i32, %arg1 : i32, i32
  }
  func.func @transform_7(%arg0: i32, %arg1: i32) -> (i32, i32) {
    %c0_i32 = arith.constant 0 : i32
    return %arg0, %arg1 : i32, i32
  }
}

module attributes {stable_mosaic.version = 11 : i64} {
  func.func @bert_token_head_kernel(%arg0: i32, %arg1: i32, %arg2: memref<16x32xf32, #tpu.memory_space<vmem>>, %arg3: memref<32x32xbf16, #tpu.memory_space<vmem>>, %arg4: memref<1x32xf32, #tpu.memory_space<vmem>>, %arg5: memref<1x32xf32, #tpu.memory_space<vmem>>, %arg6: memref<1x32xf32, #tpu.memory_space<vmem>>, %arg7: memref<32x128xbf16, #tpu.memory_space<vmem>>, %arg8: memref<1x128xf32, #tpu.memory_space<vmem>>, %arg9: memref<16x128xf32, #tpu.memory_space<vmem>>, %arg10: memref<16x32xbf16, #tpu.memory_space<vmem>>) attributes {dimension_semantics = [#tpu.dimension_semantics<parallel>, #tpu.dimension_semantics<arbitrary>], iteration_bounds = array<i64: 1, 1>, scalar_prefetch = 0 : i64, scratch_operands = 1 : i64, tpu.core_type = #tpu.core_type<tc>, window_params = [{transform_indices = @transform_0, window_bounds = array<i64: 16, 32>}, {pipeline_mode = #tpu.pipeline_mode<synchronous>, transform_indices = @transform_1, window_bounds = array<i64: 32, 32>}, {pipeline_mode = #tpu.pipeline_mode<synchronous>, transform_indices = @transform_2, window_bounds = array<i64: 1, 32>}, {pipeline_mode = #tpu.pipeline_mode<synchronous>, transform_indices = @transform_3, window_bounds = array<i64: 1, 32>}, {pipeline_mode = #tpu.pipeline_mode<synchronous>, transform_indices = @transform_4, window_bounds = array<i64: 1, 32>}, {transform_indices = @transform_5, window_bounds = array<i64: 32, 128>}, {transform_indices = @transform_6, window_bounds = array<i64: 1, 128>}, {transform_indices = @transform_7, window_bounds = array<i64: 16, 128>}]} {
    %c0_i32 = arith.constant 0 : i32
    %0 = arith.cmpi eq, %arg1, %c0_i32 : i32
    %1 = arith.extui %0 : i1 to i32
    %c0_i32_0 = arith.constant 0 : i32
    %2 = arith.cmpi ne, %1, %c0_i32_0 : i32
    scf.if %2 {
      %c0_8 = arith.constant 0 : index
      %c0_9 = arith.constant 0 : index
      %10 = vector.load %arg2[%c0_8, %c0_9] : memref<16x32xf32, #tpu.memory_space<vmem>>, vector<16x32xf32>
      %11 = arith.truncf %10 : vector<16x32xf32> to vector<16x32xbf16>
      %c0_10 = arith.constant 0 : index
      %c0_11 = arith.constant 0 : index
      %12 = vector.load %arg3[%c0_10, %c0_11] : memref<32x32xbf16, #tpu.memory_space<vmem>>, vector<32x32xbf16>
      %cst_12 = arith.constant dense<0.000000e+00> : vector<16x32xf32>
      %13 = tpu.matmul %11, %12, %cst_12 {dimension_numbers = #tpu.dot_dimension_numbers<[1], [0], [0], [1], [0, 0, 1, 1], [], []>} : vector<16x32xbf16>, vector<32x32xbf16>, vector<16x32xf32> -> vector<16x32xf32>
      %c0_13 = arith.constant 0 : index
      %c0_14 = arith.constant 0 : index
      %14 = vector.load %arg4[%c0_13, %c0_14] : memref<1x32xf32, #tpu.memory_space<vmem>>, vector<1x32xf32>
      %15 = vector.broadcast %14 : vector<1x32xf32> to vector<16x32xf32>
      %16 = arith.addf %13, %15 : vector<16x32xf32>
      %cst_15 = arith.constant 5.000000e-01 : f32
      %17 = vector.broadcast %cst_15 : f32 to vector<16x32xf32>
      %18 = arith.mulf %17, %16 : vector<16x32xf32>
      %cst_16 = arith.constant 0.707106769 : f32
      %19 = vector.broadcast %cst_16 : f32 to vector<16x32xf32>
      %20 = arith.mulf %16, %19 : vector<16x32xf32>
      %21 = math.erf %20 : vector<16x32xf32>
      %cst_17 = arith.constant 1.000000e+00 : f32
      %22 = vector.broadcast %cst_17 : f32 to vector<16x32xf32>
      %23 = arith.addf %22, %21 : vector<16x32xf32>
      %24 = arith.mulf %18, %23 : vector<16x32xf32>
      %cst_18 = arith.constant dense<0.000000e+00> : vector<16xf32>
      %25 = vector.multi_reduction <add>, %24, %cst_18 [1] : vector<16x32xf32> to vector<16xf32>
      %26 = vector.shape_cast %25 : vector<16xf32> to vector<16x1xf32>
      %cst_19 = arith.constant 3.200000e+01 : f32
      %27 = vector.broadcast %cst_19 : f32 to vector<16x1xf32>
      %28 = arith.divf %26, %27 : vector<16x1xf32>
      %29 = vector.broadcast %28 : vector<16x1xf32> to vector<16x32xf32>
      %30 = arith.subf %24, %29 : vector<16x32xf32>
      %31 = arith.mulf %30, %30 : vector<16x32xf32>
      %cst_20 = arith.constant dense<0.000000e+00> : vector<16xf32>
      %32 = vector.multi_reduction <add>, %31, %cst_20 [1] : vector<16x32xf32> to vector<16xf32>
      %33 = vector.shape_cast %32 : vector<16xf32> to vector<16x1xf32>
      %cst_21 = arith.constant 3.200000e+01 : f32
      %34 = vector.broadcast %cst_21 : f32 to vector<16x1xf32>
      %35 = arith.divf %33, %34 : vector<16x1xf32>
      %cst_22 = arith.constant 9.99999996E-13 : f32
      %36 = vector.broadcast %cst_22 : f32 to vector<16x1xf32>
      %37 = arith.addf %35, %36 : vector<16x1xf32>
      %38 = math.rsqrt %37 : vector<16x1xf32>
      %39 = vector.broadcast %38 : vector<16x1xf32> to vector<16x32xf32>
      %40 = arith.mulf %30, %39 : vector<16x32xf32>
      %c0_23 = arith.constant 0 : index
      %c0_24 = arith.constant 0 : index
      %41 = vector.load %arg5[%c0_23, %c0_24] : memref<1x32xf32, #tpu.memory_space<vmem>>, vector<1x32xf32>
      %42 = vector.broadcast %41 : vector<1x32xf32> to vector<16x32xf32>
      %43 = arith.mulf %40, %42 : vector<16x32xf32>
      %c0_25 = arith.constant 0 : index
      %c0_26 = arith.constant 0 : index
      %44 = vector.load %arg6[%c0_25, %c0_26] : memref<1x32xf32, #tpu.memory_space<vmem>>, vector<1x32xf32>
      %45 = vector.broadcast %44 : vector<1x32xf32> to vector<16x32xf32>
      %46 = arith.addf %43, %45 : vector<16x32xf32>
      %47 = arith.truncf %46 : vector<16x32xf32> to vector<16x32xbf16>
      %c0_27 = arith.constant 0 : index
      %c0_28 = arith.constant 0 : index
      %48 = vector.load %arg10[%c0_27, %c0_28] : memref<16x32xbf16, #tpu.memory_space<vmem>>, vector<16x32xbf16>
      tpu.vector_store %arg10[%c0_27, %c0_28], %47 {strides = array<i32>} : memref<16x32xbf16, #tpu.memory_space<vmem>>, vector<16x32xbf16>,
    } else {
    }
    %c0 = arith.constant 0 : index
    %c0_1 = arith.constant 0 : index
    %3 = vector.load %arg10[%c0, %c0_1] : memref<16x32xbf16, #tpu.memory_space<vmem>>, vector<16x32xbf16>
    %c0_2 = arith.constant 0 : index
    %c0_3 = arith.constant 0 : index
    %4 = vector.load %arg7[%c0_2, %c0_3] : memref<32x128xbf16, #tpu.memory_space<vmem>>, vector<32x128xbf16>
    %cst = arith.constant dense<0.000000e+00> : vector<16x128xf32>
    %5 = tpu.matmul %3, %4, %cst {dimension_numbers = #tpu.dot_dimension_numbers<[1], [0], [0], [1], [0, 0, 1, 1], [], []>} : vector<16x32xbf16>, vector<32x128xbf16>, vector<16x128xf32> -> vector<16x128xf32>
    %c0_4 = arith.constant 0 : index
    %c0_5 = arith.constant 0 : index
    %6 = vector.load %arg8[%c0_4, %c0_5] : memref<1x128xf32, #tpu.memory_space<vmem>>, vector<1x128xf32>
    %7 = vector.broadcast %6 : vector<1x128xf32> to vector<16x128xf32>
    %8 = arith.addf %5, %7 : vector<16x128xf32>
    %c0_6 = arith.constant 0 : index
    %c0_7 = arith.constant 0 : index
    %9 = vector.load %arg9[%c0_6, %c0_7] : memref<16x128xf32, #tpu.memory_space<vmem>>, vector<16x128xf32>
    tpu.vector_store %arg9[%c0_6, %c0_7], %8 {strides = array<i32>} : memref<16x128xf32, #tpu.memory_space<vmem>>, vector<16x128xf32>,
    return
  }
  func.func @transform_0(%arg0: i32, %arg1: i32) -> (i32, i32) {
    %c0_i32 = arith.constant 0 : i32
    %c0_i32_0 = arith.constant 0 : i32
    return %arg0, %c0_i32 : i32, i32
  }
  func.func @transform_1(%arg0: i32, %arg1: i32) -> (i32, i32) {
    %c0_i32 = arith.constant 0 : i32
    %c0_i32_0 = arith.constant 0 : i32
    %c0_i32_1 = arith.constant 0 : i32
    return %c0_i32, %c0_i32_0 : i32, i32
  }
  func.func @transform_2(%arg0: i32, %arg1: i32) -> (i32, i32) {
    %c0_i32 = arith.constant 0 : i32
    %c0_i32_0 = arith.constant 0 : i32
    %c0_i32_1 = arith.constant 0 : i32
    return %c0_i32, %c0_i32_0 : i32, i32
  }
  func.func @transform_3(%arg0: i32, %arg1: i32) -> (i32, i32) {
    %c0_i32 = arith.constant 0 : i32
    %c0_i32_0 = arith.constant 0 : i32
    %c0_i32_1 = arith.constant 0 : i32
    return %c0_i32, %c0_i32_0 : i32, i32
  }
  func.func @transform_4(%arg0: i32, %arg1: i32) -> (i32, i32) {
    %c0_i32 = arith.constant 0 : i32
    %c0_i32_0 = arith.constant 0 : i32
    %c0_i32_1 = arith.constant 0 : i32
    return %c0_i32, %c0_i32_0 : i32, i32
  }
  func.func @transform_5(%arg0: i32, %arg1: i32) -> (i32, i32) {
    %c0_i32 = arith.constant 0 : i32
    %c0_i32_0 = arith.constant 0 : i32
    return %c0_i32, %arg1 : i32, i32
  }
  func.func @transform_6(%arg0: i32, %arg1: i32) -> (i32, i32) {
    %c0_i32 = arith.constant 0 : i32
    %c0_i32_0 = arith.constant 0 : i32
    return %c0_i32, %arg1 : i32, i32
  }
  func.func @transform_7(%arg0: i32, %arg1: i32) -> (i32, i32) {
    %c0_i32 = arith.constant 0 : i32
    return %arg0, %arg1 : i32, i32
  }
}

</mosaic_0001>

<bundles_post_ra>
// kernel: tpu_custom_call.1
= control target key start
LH: loop header
LB: loop body
LE: loop exit
PB: predicated region body
PF: predicated region fallthrough
CT: control target
= control target key end

     0   :  { %12 = vsyncpa [#allocation4], 0  ;;  %s595_s0 = inlined_call_operand.hbm [shape: f32[16,32], index: 0, kind: input, shape index: {}]   ;;  %s596_s1 = inlined_call_operand.hbm [shape: bf16[32,32], index: 1, kind: input, shape index: {}]   ;;  %s597_s2 = inlined_call_operand.vmem [shape: f32[1,32], index: 2, kind: input, shape index: {}]   ;;  %s598_s3 = inlined_call_operand.vmem [shape: f32[1,32], index: 3, kind: input, shape index: {}]   ;;  %s599_s4 = inlined_call_operand.vmem [shape: f32[1,32], index: 4, kind: input, shape index: {}]   ;;  %s600_s5 = inlined_call_operand.hbm [shape: bf16[32,128], index: 5, kind: input, shape index: {}]   ;;  %s601_s6 = inlined_call_operand.vmem [shape: f32[1,128], index: 6, kind: input, shape index: {}]   ;;  %s602_s7 = inlined_call_operand.hbm [shape: f32[16,128], index: 7, kind: output, shape index: {}]  }
   0x1   :  { %13 = vsyncpa [#allocation7], 0  ;;  %s32_s26 = sshll.u32 %s596_s1, 4  ;;  %s33_s26 = int_to_ptr.hbm [resolvable:$true] %s32_s26 }
   0x2   :  { %14 = vsyncpa [#allocation5], 0  ;;  %s497_s27 = smov [#allocation6]   ;;  %s19_s8 = sshll.u32 %s595_s0, 4  ;;  %s20_s8 = int_to_ptr.hbm [resolvable:$true] %s19_s8 }
   0x3   :  { %s34_s28 = sshll.u32 %s497_s27, 4  ;;  %s498_s9 = smov 64   ;;  %s35_s28 = int_to_ptr.vmem [resolvable:$true] %s34_s28 }
   0x4   :  { %s499_s10 = smov 4   ;;  %s500_s11 = smov [#allocation3]  }
   0x5   :  { %40 = dma.hbm_to_vmem [thread:$0]  %s33_s26, 256, %s35_s28, [#allocation7], %s498_s9, %s498_s9, %s499_s10  }
   0x6   :  { %s21_s12 = sshll.u32 %s500_s11, 4  ;;  %s501_s13 = smov 128   ;;  %s22_s12 = int_to_ptr.vmem [resolvable:$true] %s21_s12 }
   0x7   :  { %s502_s14 = smov 8   ;;  %s51_s16 = sshll.u32 %s600_s5, 4  ;;  %s52_s16 = int_to_ptr.hbm [resolvable:$true] %s51_s16 }
   0x8   :  { %27 = dma.hbm_to_vmem [thread:$0]  %s20_s8, 256, %s22_s12, [#allocation4], %s501_s13, %s501_s13, %s502_s14  }
   0x9   :  { %s503_s17 = smov [#allocation8]  }
   0xa   :  { %s53_s0 = sshll.u32 %s503_s17, 4  ;;  %s54_s0 = int_to_ptr.vmem [resolvable:$true] %s53_s0 }
   0xb   :  { %59 = dma.hbm_to_vmem [thread:$0]  %s52_s16, 256, %s54_s0, [#allocation7], %s498_s9, %s498_s9, %s499_s10  }
   0xc   :  { %491 = dma.done.wait [#allocation4], 256  }
   0xd   :  { %492 = vsyncadd [#allocation4], 4294967040 }
   0xe   :  { %493 = dma.done.wait [#allocation7], 512  }
   0xf   :  { %494 = vsyncadd [#allocation7], 4294966784  ;;  %v368_v0 = vld [vmem:[#allocation6 + $0x8] sm:$0xff]  ;;  %v367_v1 = vld [vmem:[#allocation6] sm:$0xff]  ;;  %vm102_vm0 = vcmask 261120   ;;  %vm273_vm14 = vcmask 257024  }
  0x10   :  { %v79_v2 = vld [vmem:[#allocation3] sm:$0xff]  ;;  %v80_v3 = vld [vmem:[#allocation3 + $0x8] sm:$0xff]  ;;  %112 = vmatpush.bf16.msra.mxu0 %v368_v0  ;;  %v381_v5 = vld [vmem:[%s597_s2] ss:$0 sm:$0xff]  ;;  %s505_s22 = smov [#allocation9]   ;;  %s329_s26 = sshll.u32 %s602_s7, 4  ;;  %s330_s26 = int_to_ptr.hbm [resolvable:$true] %s329_s26 }
  0x11   :  { %v81_v4 = vpack.c.bf16 %v80_v3, %v79_v2  ;;  %s327_s23 = sshll.u32 %s505_s22, 4  ;;  %s328_s23 = int_to_ptr.vmem [resolvable:$true] %s327_s23 }
  0x14   :  { %113 = vmatpush.bf16.msra.mxu0 %v367_v1 }
  0x17   :  { %351 = vmatmul.msk.bf16.vlgmr.msra.gmra.mxu0 %vm102_vm0, %v81_v4 }
  0x94   :  { %v115_v6 = vpop.f32.mrf.mxu0 }
  0x95   :  { %v562_v7 = vadd.f32 %v381_v5, %v115_v6 }
  0x97   :  { %v122_v8 = vmul.f32 0.70710677, %v562_v7 }
  0x99   :  { %v124_v9 = vmul.f32 %v122_v8, %v122_v8 }
  0x9b   :  { %v125_v10 = vmin.f32 %v124_v9, 16.0 }
  0x9c   :  { %v117_v11 = vpop.f32.mrf.mxu0 }
  0x9d   :  { %v126_v12 = vmul.f32 2.1237322e-06, %v125_v10  ;;  %v565_v13 = vadd.f32 %v381_v5, %v117_v11  ;;  %v137_v14 = vmul.f32 3.8918573e-05, %v125_v10 }
  0x9f   :  { %v127_v15 = vadd.f32 0.00028619796, %v126_v12  ;;  %v568_v16 = vmul.f32 0.70710677, %v565_v13  ;;  %v138_v17 = vadd.f32 0.001143296, %v137_v14 }
  0xa1   :  { %v128_v18 = vmul.f32 %v127_v15, %v125_v10  ;;  %v164_v19 = vmul.f32 %v568_v16, %v568_v16  ;;  %v139_v20 = vmul.f32 %v138_v17, %v125_v10  ;;  %v120_v15 = vmul.f32 0.5, %v562_v7 }
  0xa3   :  { %v165_v21 = vmin.f32 %v164_v19, 16.0  ;;  %v140_v22 = vadd.f32 0.014752088, %v139_v20  ;;  %v129_v23 = vadd.f32 0.0036580483, %v128_v18 }
  0xa5   :  { %v166_v24 = vmul.f32 2.1237322e-06, %v165_v21  ;;  %v177_v25 = vmul.f32 3.8918573e-05, %v165_v21  ;;  %v141_v26 = vmul.f32 %v140_v22, %v125_v10  ;;  %v130_v30 = vmul.f32 %v129_v23, %v125_v10 }
  0xa7   :  { %v167_v27 = vadd.f32 0.00028619796, %v166_v24  ;;  %v178_v28 = vadd.f32 0.001143296, %v177_v25  ;;  %v142_v29 = vadd.f32 0.112945676, %v141_v26 }
  0xa8   :  { %v131_v37 = vadd.f32 0.05243302, %v130_v30  ;;  %v121_v25 = vmul.f32 0.5, %v565_v13 }
  0xa9   :  { %v168_v31 = vmul.f32 %v167_v27, %v165_v21  ;;  %v179_v32 = vmul.f32 %v178_v28, %v165_v21  ;;  %v143_v33 = vmul.f32 %v142_v29, %v125_v10  ;;  %v504_v28 = vmov 32.0  }
  0xaa   :  { %v132_v43 = vmul.f32 %v131_v37, %v125_v10 }
  0xab   :  { %v180_v34 = vadd.f32 0.014752088, %v179_v32  ;;  %v169_v35 = vadd.f32 0.0036580483, %v168_v31  ;;  %v144_v36 = vadd.f32 0.4994258, %v143_v33 }
  0xac   :  { %v133_v47 = vadd.f32 0.18741608, %v132_v43 }
  0xad   :  { %v181_v38 = vmul.f32 %v180_v34, %v165_v21  ;;  %v145_v39 = vmul.f32 %v144_v36, %v125_v10  ;;  %v170_v41 = vmul.f32 %v169_v35, %v165_v21 }
  0xae   :  { %v134_v52 = vmul.f32 %v133_v47, %v125_v10 }
  0xaf   :  { %v182_v40 = vadd.f32 0.112945676, %v181_v38  ;;  %v146_v42 = vadd.f32 1.0, %v145_v39  ;;  %v171_v46 = vadd.f32 0.05243302, %v170_v41 }
  0xb0   :  { %v135_v57 = vadd.f32 1.1283791, %v134_v52 }
  0xb1   :  { %v183_v44 = vmul.f32 %v182_v40, %v165_v21  ;;  %385 = vrcp.f32 %v146_v42  ;;  %v172_v51 = vmul.f32 %v171_v46, %v165_v21  ;;  %v158_v56 = vand.u32 2147483648, %v146_v42  ;;  %v371_v46 = vld [vmem:[#allocation8 + $0x8] sm:$0xff] }
  0xb2   :  { %v156_v59 = vand.u32 2147483647, %v146_v42  ;;  %vm152_vm2 = vweird.f32 %v146_v42  ;;  %v136_v1 = vmul.f32 %v135_v57, %v122_v8  ;;  %313 = vmatpush.bf16.msra.mxu1 %v371_v46 }
  0xb3   :  { %v184_v45 = vadd.f32 0.4994258, %v183_v44  ;;  %v173_v55 = vadd.f32 0.18741608, %v172_v51  ;;  %v159_v63 = vor.u32 1.1754944e-38, %v158_v56 }
  0xb4   :  { %vm157_vm4 = vcmp.eq.f32.partialorder %v156_v59, 8.507059e+37  ;;  %v382_v59 = vld [vmem:[%s598_s3] ss:$0 sm:$0xff] }
  0xb5   :  { %v185_v48 = vmul.f32 %v184_v45, %v165_v21  ;;  %v174_v62 = vmul.f32 %v173_v55, %v165_v21 }
  0xb7   :  { %v186_v49 = vadd.f32 1.0, %v185_v48  ;;  %v386_v50 = vpop.eup %385  ;;  %v175_v9 = vadd.f32 1.1283791, %v174_v62  ;;  %v383_v62 = vld [vmem:[%s599_s4] ss:$0 sm:$0xff] }
  0xb8   :  { %v148_v53 = vmul.f32 %v386_v50, %v146_v42  ;;  %vm153_vm1 = vweird.f32 %v386_v50 }
  0xb9   :  { %387 = vrcp.f32 %v186_v49  ;;  %vm154_vm3 = vmor %vm152_vm2, %vm153_vm1  ;;  %v198_v6 = vand.u32 2147483648, %v186_v49  ;;  %v196_v11 = vand.u32 2147483647, %v186_v49  ;;  %vm192_vm6 = vweird.f32 %v186_v49 }
  0xba   :  { %v149_v54 = vsub.f32 1.0, %v148_v53  ;;  %v176_v8 = vmul.f32 %v175_v9, %v568_v16  ;;  %389 = vrcp.f32 %v504_v28 }
  0xbb   :  { %v199_v18 = vor.u32 1.1754944e-38, %v198_v6  ;;  %vm197_vm8 = vcmp.eq.f32.partialorder %v196_v11, 8.507059e+37 }
  0xbc   :  { %v150_v58 = vmul.f32 %v386_v50, %v149_v54 }
  0xbe   :  { %v151_v61 = vadd.f32 %v386_v50, %v150_v58 }
  0xbf   :  { %v388_v60 = vpop.eup %387 }
  0xc0   :  { %v188_v0 = vmul.f32 %v388_v60, %v186_v49  ;;  %v155_v2 = vsel %vm154_vm3, %v386_v50, %v151_v61  ;;  %vm193_vm5 = vweird.f32 %v388_v60  ;;  %v390_v29 = vpop.eup %389  ;;  %v370_v49 = vld [vmem:[#allocation8] sm:$0xff] }
  0xc1   :  { %v160_v3 = vsel %vm157_vm4, %v159_v63, %v155_v2  ;;  %vm194_vm7 = vmor %vm192_vm6, %vm193_vm5  ;;  %v215_v16 = vmul.f32 32.0, %v390_v29  ;;  %vm219_vm9 = vweird.f32 %v390_v29  ;;  %314 = vmatpush.bf16.msra.mxu1 %v370_v49 }
  0xc2   :  { %v189_v4 = vsub.f32 1.0, %v188_v0  ;;  %v161_v5 = vmul.f32 %v160_v3, %v136_v1 }
  0xc3   :  { %v216_v30 = vsub.f32 1.0, %v215_v16 }
  0xc4   :  { %v190_v10 = vmul.f32 %v388_v60, %v189_v4  ;;  %v352_v12 = vclamps-f32 %v161_v5, 1.0 }
  0xc5   :  { %v217_v31 = vmul.f32 %v390_v29, %v216_v30 }
  0xc6   :  { %v191_v14 = vadd.f32 %v388_v60, %v190_v10  ;;  %v204_v17 = vadd.f32 1.0, %v352_v12 }
  0xc7   :  { %v218_v32 = vadd.f32 %v390_v29, %v217_v31 }
  0xc8   :  { %v195_v19 = vsel %vm194_vm7, %v388_v60, %v191_v14  ;;  %v206_v20 = vmul.f32 %v204_v17, %v120_v15  ;;  %v384_v15 = vld [vmem:[%s601_s6] ss:$0 sm:$0xff] }
  0xc9   :  { %v200_v21 = vsel %vm197_vm8, %v199_v18, %v195_v19  ;;  %v220_v33 = vsel %vm219_vm9, %v390_v29, %v218_v32 }
  0xca   :  { %v201_v22 = vmul.f32 %v200_v21, %v176_v8  ;;  %v208_v23 = vsel %vm102_vm0, %v206_v20, 0.0 }
  0xcb   :  { %209 = vadd.xlane.f32.xlu0 %v208_v23 }
  0xcc   :  { %v353_v24 = vclamps-f32 %v201_v22, 1.0 }
  0xce   :  { %v205_v26 = vadd.f32 1.0, %v353_v24 }
  0xd0   :  { %v207_v27 = vmul.f32 %v205_v26, %v121_v25 }
  0xd2   :  { %v211_v7 = vsel %vm102_vm0, %v207_v27, 0.0 }
  0xd3   :  { %212 = vadd.xlane.f32.xlu0 %v211_v7 }
 0x13e   :  { %v210_v34 = vpop.xlane.xlu0 %209 }
 0x13f   :  { %v221_v35 = vmul.f32 %v220_v33, %v210_v34 }
 0x141   :  { %v223_v36 = vsub.f32 %v206_v20, %v221_v35 }
 0x143   :  { %v225_v37 = vmul.f32 %v223_v36, %v223_v36 }
 0x145   :  { %v227_v13 = vsel %vm102_vm0, %v225_v37, 0.0 }
 0x146   :  { %228 = vadd.xlane.f32.xlu1 %v227_v13  ;;  %v213_v38 = vpop.xlane.xlu0 %212 }
 0x147   :  { %v222_v39 = vmul.f32 %v220_v33, %v213_v38 }
 0x149   :  { %v224_v40 = vsub.f32 %v207_v27, %v222_v39 }
 0x14b   :  { %v226_v41 = vmul.f32 %v224_v40, %v224_v40 }
 0x14d   :  { %v230_v42 = vsel %vm102_vm0, %v226_v41, 0.0 }
 0x14e   :  { %231 = vadd.xlane.f32.xlu1 %v230_v42 }
 0x1b9   :  { %v229_v43 = vpop.xlane.xlu1 %228 }
 0x1ba   :  { %v233_v44 = vmul.f32 %v229_v43, %v220_v33 }
 0x1bc   :  { %v235_v45 = vadd.f32 1e-12, %v233_v44 }
 0x1be   :  { %391 = vrsqrt.f32 %v235_v45  ;;  %vm243_vm11 = vweird.f32 %v235_v45 }
 0x1c1   :  { %v232_v47 = vpop.xlane.xlu1 %231 }
 0x1c2   :  { %v234_v48 = vmul.f32 %v232_v47, %v220_v33 }
 0x1c4   :  { %v392_v50 = vpop.eup %391  ;;  %v236_v51 = vadd.f32 1e-12, %v234_v48 }
 0x1c5   :  { %v238_v52 = vmul.f32 %v392_v50, %v235_v45  ;;  %vm244_vm10 = vweird.f32 %v392_v50 }
 0x1c6   :  { %393 = vrsqrt.f32 %v236_v51  ;;  %vm245_vm12 = vmor %vm243_vm11, %vm244_vm10  ;;  %vm253_vm15 = vweird.f32 %v236_v51 }
 0x1c7   :  { %v239_v53 = vmul.f32 %v392_v50, %v238_v52 }
 0x1c9   :  { %v240_v54 = vmul.f32 0.5, %v239_v53 }
 0x1cb   :  { %v241_v55 = vsub.f32 1.5, %v240_v54 }
 0x1cc   :  { %v394_v56 = vpop.eup %393 }
 0x1cd   :  { %v242_v57 = vmul.f32 %v392_v50, %v241_v55  ;;  %v248_v58 = vmul.f32 %v394_v56, %v236_v51  ;;  %vm254_vm13 = vweird.f32 %v394_v56 }
 0x1ce   :  { %vm255_vm1 = vmor %vm253_vm15, %vm254_vm13 }
 0x1cf   :  { %v246_v60 = vsel %vm245_vm12, %v392_v50, %v242_v57  ;;  %v249_v61 = vmul.f32 %v394_v56, %v248_v58 }
 0x1d0   :  { %v257_v63 = vmul.f32 %v246_v60, %v223_v36 }
 0x1d1   :  { %v250_v0 = vmul.f32 0.5, %v249_v61 }
 0x1d2   :  { %v263_v1 = vmul.f32 %v382_v59, %v257_v63 }
 0x1d3   :  { %v251_v2 = vsub.f32 1.5, %v250_v0 }
 0x1d4   :  { %v269_v3 = vadd.f32 %v383_v62, %v263_v1 }
 0x1d5   :  { %v252_v4 = vmul.f32 %v394_v56, %v251_v2 }
 0x1d6   :  { %v271_v5 = vpack.c.bf16 %v269_v3, %v269_v3 }
 0x1d7   :  { %v256_v6 = vsel %vm255_vm1, %v394_v56, %v252_v4 }
 0x1d8   :  { %274 = vst.msk [vmem:[#allocation2] sm:$0xf] %vm273_vm14, %v271_v5  ;;  %v258_v9 = vmul.f32 %v256_v6, %v224_v40 }
 0x1da   :  { %v264_v10 = vmul.f32 %v382_v59, %v258_v9 }
 0x1dc   :  { %v270_v11 = vadd.f32 %v383_v62, %v264_v10 }
 0x1de   :  { %v272_v12 = vpack.c.bf16 %v270_v11, %v270_v11 }
 0x1e0   :  { %275 = vst.msk [vmem:[#allocation2 + $0x4] sm:$0xf] %vm273_vm14, %v272_v12 }
 0x1e7   :  { %v369_v14 = vld [vmem:[#allocation2] sm:$0xff] }
 0x1e8   :  { %366 = vmatmul.msk.bf16.vlgmr.msra.gmra.mxu1 %vm102_vm0, %v369_v14 }
 0x265   :  { %v316_v17 = vpop.f32.mrf.mxu1 }
 0x266   :  { %v317_v18 = vadd.f32 %v384_v15, %v316_v17 }
 0x268   :  { %321 = vst [vmem:[#allocation9] sm:$0xff] %v317_v18 }
 0x26d   :  { %v318_v8 = vpop.f32.mrf.mxu1 }
 0x26e   :  { %v319_v19 = vadd.f32 %v384_v15, %v318_v8 }
 0x270   :  { %322 = vst [vmem:[#allocation9 + $0x8] sm:$0xff] %v319_v19 }
 0x271   :  { %335 = dma.vmem_to_hbm [thread:$0]  %s328_s23, 256, %s330_s26, [#allocation5], %s501_s13, %s501_s13, %s502_s14  }
 0x272   :  { %495 = dma.done.wait [#allocation5], 256  }
 0x273   :  { %496 = vsyncadd [#allocation5], 4294967040 }
 0x274   :  { %340 = vsyncpa [#allocation4], 1 }
 0x275   :  { %341 = vsyncpa [#allocation7], 1 }
 0x276   :  { %342 = vsyncpa [#allocation5], 1 }

// kernel: tpu_custom_call.1
= control target key start
LH: loop header
LB: loop body
LE: loop exit
PB: predicated region body
PF: predicated region fallthrough
CT: control target
= control target key end

     0   :  { %12 = vsyncpa [#allocation4], 0  ;;  %s595_s0 = inlined_call_operand.hbm [shape: f32[16,32], index: 0, kind: input, shape index: {}]   ;;  %s596_s1 = inlined_call_operand.hbm [shape: bf16[32,32], index: 1, kind: input, shape index: {}]   ;;  %s597_s2 = inlined_call_operand.vmem [shape: f32[1,32], index: 2, kind: input, shape index: {}]   ;;  %s598_s3 = inlined_call_operand.vmem [shape: f32[1,32], index: 3, kind: input, shape index: {}]   ;;  %s599_s4 = inlined_call_operand.vmem [shape: f32[1,32], index: 4, kind: input, shape index: {}]   ;;  %s600_s5 = inlined_call_operand.hbm [shape: bf16[32,128], index: 5, kind: input, shape index: {}]   ;;  %s601_s6 = inlined_call_operand.vmem [shape: f32[1,128], index: 6, kind: input, shape index: {}]   ;;  %s602_s7 = inlined_call_operand.hbm [shape: f32[16,128], index: 7, kind: output, shape index: {}]  }
   0x1   :  { %13 = vsyncpa [#allocation7], 0  ;;  %s32_s26 = sshll.u32 %s596_s1, 4  ;;  %s33_s26 = int_to_ptr.hbm [resolvable:$true] %s32_s26 }
   0x2   :  { %14 = vsyncpa [#allocation5], 0  ;;  %s497_s27 = smov [#allocation6]   ;;  %s19_s8 = sshll.u32 %s595_s0, 4  ;;  %s20_s8 = int_to_ptr.hbm [resolvable:$true] %s19_s8 }
   0x3   :  { %s34_s28 = sshll.u32 %s497_s27, 4  ;;  %s498_s9 = smov 64   ;;  %s35_s28 = int_to_ptr.vmem [resolvable:$true] %s34_s28 }
   0x4   :  { %s499_s10 = smov 4   ;;  %s500_s11 = smov [#allocation3]  }
   0x5   :  { %40 = dma.hbm_to_vmem [thread:$0]  %s33_s26, 256, %s35_s28, [#allocation7], %s498_s9, %s498_s9, %s499_s10  }
   0x6   :  { %s21_s12 = sshll.u32 %s500_s11, 4  ;;  %s501_s13 = smov 128   ;;  %s22_s12 = int_to_ptr.vmem [resolvable:$true] %s21_s12 }
   0x7   :  { %s502_s14 = smov 8   ;;  %s51_s16 = sshll.u32 %s600_s5, 4  ;;  %s52_s16 = int_to_ptr.hbm [resolvable:$true] %s51_s16 }
   0x8   :  { %27 = dma.hbm_to_vmem [thread:$0]  %s20_s8, 256, %s22_s12, [#allocation4], %s501_s13, %s501_s13, %s502_s14  }
   0x9   :  { %s503_s17 = smov [#allocation8]  }
   0xa   :  { %s53_s0 = sshll.u32 %s503_s17, 4  ;;  %s54_s0 = int_to_ptr.vmem [resolvable:$true] %s53_s0 }
   0xb   :  { %59 = dma.hbm_to_vmem [thread:$0]  %s52_s16, 256, %s54_s0, [#allocation7], %s498_s9, %s498_s9, %s499_s10  }
   0xc   :  { %491 = dma.done.wait [#allocation4], 256  }
   0xd   :  { %492 = vsyncadd [#allocation4], 4294967040 }
   0xe   :  { %493 = dma.done.wait [#allocation7], 512  }
   0xf   :  { %494 = vsyncadd [#allocation7], 4294966784  ;;  %v368_v0 = vld [vmem:[#allocation6 + $0x8] sm:$0xff]  ;;  %v367_v1 = vld [vmem:[#allocation6] sm:$0xff]  ;;  %vm102_vm0 = vcmask 261120   ;;  %vm273_vm14 = vcmask 257024  }
  0x10   :  { %v79_v2 = vld [vmem:[#allocation3] sm:$0xff]  ;;  %v80_v3 = vld [vmem:[#allocation3 + $0x8] sm:$0xff]  ;;  %112 = vmatpush.bf16.msra.mxu0 %v368_v0  ;;  %v381_v5 = vld [vmem:[%s597_s2] ss:$0 sm:$0xff]  ;;  %s505_s22 = smov [#allocation9]   ;;  %s329_s26 = sshll.u32 %s602_s7, 4  ;;  %s330_s26 = int_to_ptr.hbm [resolvable:$true] %s329_s26 }
  0x11   :  { %v81_v4 = vpack.c.bf16 %v80_v3, %v79_v2  ;;  %s327_s23 = sshll.u32 %s505_s22, 4  ;;  %s328_s23 = int_to_ptr.vmem [resolvable:$true] %s327_s23 }
  0x14   :  { %113 = vmatpush.bf16.msra.mxu0 %v367_v1 }
  0x17   :  { %351 = vmatmul.msk.bf16.vlgmr.msra.gmra.mxu0 %vm102_vm0, %v81_v4 }
  0x94   :  { %v115_v6 = vpop.f32.mrf.mxu0 }
  0x95   :  { %v562_v7 = vadd.f32 %v381_v5, %v115_v6 }
  0x97   :  { %v122_v8 = vmul.f32 0.70710677, %v562_v7 }
  0x99   :  { %v124_v9 = vmul.f32 %v122_v8, %v122_v8 }
  0x9b   :  { %v125_v10 = vmin.f32 %v124_v9, 16.0 }
  0x9c   :  { %v117_v11 = vpop.f32.mrf.mxu0 }
  0x9d   :  { %v126_v12 = vmul.f32 2.1237322e-06, %v125_v10  ;;  %v565_v13 = vadd.f32 %v381_v5, %v117_v11  ;;  %v137_v14 = vmul.f32 3.8918573e-05, %v125_v10 }
  0x9f   :  { %v127_v15 = vadd.f32 0.00028619796, %v126_v12  ;;  %v568_v16 = vmul.f32 0.70710677, %v565_v13  ;;  %v138_v17 = vadd.f32 0.001143296, %v137_v14 }
  0xa1   :  { %v128_v18 = vmul.f32 %v127_v15, %v125_v10  ;;  %v164_v19 = vmul.f32 %v568_v16, %v568_v16  ;;  %v139_v20 = vmul.f32 %v138_v17, %v125_v10  ;;  %v120_v15 = vmul.f32 0.5, %v562_v7 }
  0xa3   :  { %v165_v21 = vmin.f32 %v164_v19, 16.0  ;;  %v140_v22 = vadd.f32 0.014752088, %v139_v20  ;;  %v129_v23 = vadd.f32 0.0036580483, %v128_v18 }
  0xa5   :  { %v166_v24 = vmul.f32 2.1237322e-06, %v165_v21  ;;  %v177_v25 = vmul.f32 3.8918573e-05, %v165_v21  ;;  %v141_v26 = vmul.f32 %v140_v22, %v125_v10  ;;  %v130_v30 = vmul.f32 %v129_v23, %v125_v10 }
  0xa7   :  { %v167_v27 = vadd.f32 0.00028619796, %v166_v24  ;;  %v178_v28 = vadd.f32 0.001143296, %v177_v25  ;;  %v142_v29 = vadd.f32 0.112945676, %v141_v26 }
  0xa8   :  { %v131_v37 = vadd.f32 0.05243302, %v130_v30  ;;  %v121_v25 = vmul.f32 0.5, %v565_v13 }
  0xa9   :  { %v168_v31 = vmul.f32 %v167_v27, %v165_v21  ;;  %v179_v32 = vmul.f32 %v178_v28, %v165_v21  ;;  %v143_v33 = vmul.f32 %v142_v29, %v125_v10  ;;  %v504_v28 = vmov 32.0  }
  0xaa   :  { %v132_v43 = vmul.f32 %v131_v37, %v125_v10 }
  0xab   :  { %v180_v34 = vadd.f32 0.014752088, %v179_v32  ;;  %v169_v35 = vadd.f32 0.0036580483, %v168_v31  ;;  %v144_v36 = vadd.f32 0.4994258, %v143_v33 }
  0xac   :  { %v133_v47 = vadd.f32 0.18741608, %v132_v43 }
  0xad   :  { %v181_v38 = vmul.f32 %v180_v34, %v165_v21  ;;  %v145_v39 = vmul.f32 %v144_v36, %v125_v10  ;;  %v170_v41 = vmul.f32 %v169_v35, %v165_v21 }
  0xae   :  { %v134_v52 = vmul.f32 %v133_v47, %v125_v10 }
  0xaf   :  { %v182_v40 = vadd.f32 0.112945676, %v181_v38  ;;  %v146_v42 = vadd.f32 1.0, %v145_v39  ;;  %v171_v46 = vadd.f32 0.05243302, %v170_v41 }
  0xb0   :  { %v135_v57 = vadd.f32 1.1283791, %v134_v52 }
  0xb1   :  { %v183_v44 = vmul.f32 %v182_v40, %v165_v21  ;;  %385 = vrcp.f32 %v146_v42  ;;  %v172_v51 = vmul.f32 %v171_v46, %v165_v21  ;;  %v158_v56 = vand.u32 2147483648, %v146_v42  ;;  %v371_v46 = vld [vmem:[#allocation8 + $0x8] sm:$0xff] }
  0xb2   :  { %v156_v59 = vand.u32 2147483647, %v146_v42  ;;  %vm152_vm2 = vweird.f32 %v146_v42  ;;  %v136_v1 = vmul.f32 %v135_v57, %v122_v8  ;;  %313 = vmatpush.bf16.msra.mxu1 %v371_v46 }
  0xb3   :  { %v184_v45 = vadd.f32 0.4994258, %v183_v44  ;;  %v173_v55 = vadd.f32 0.18741608, %v172_v51  ;;  %v159_v63 = vor.u32 1.1754944e-38, %v158_v56 }
  0xb4   :  { %vm157_vm4 = vcmp.eq.f32.partialorder %v156_v59, 8.507059e+37  ;;  %v382_v59 = vld [vmem:[%s598_s3] ss:$0 sm:$0xff] }
  0xb5   :  { %v185_v48 = vmul.f32 %v184_v45, %v165_v21  ;;  %v174_v62 = vmul.f32 %v173_v55, %v165_v21 }
  0xb7   :  { %v186_v49 = vadd.f32 1.0, %v185_v48  ;;  %v386_v50 = vpop.eup %385  ;;  %v175_v9 = vadd.f32 1.1283791, %v174_v62  ;;  %v383_v62 = vld [vmem:[%s599_s4] ss:$0 sm:$0xff] }
  0xb8   :  { %v148_v53 = vmul.f32 %v386_v50, %v146_v42  ;;  %vm153_vm1 = vweird.f32 %v386_v50 }
  0xb9   :  { %387 = vrcp.f32 %v186_v49  ;;  %vm154_vm3 = vmor %vm152_vm2, %vm153_vm1  ;;  %v198_v6 = vand.u32 2147483648, %v186_v49  ;;  %v196_v11 = vand.u32 2147483647, %v186_v49  ;;  %vm192_vm6 = vweird.f32 %v186_v49 }
  0xba   :  { %v149_v54 = vsub.f32 1.0, %v148_v53  ;;  %v176_v8 = vmul.f32 %v175_v9, %v568_v16  ;;  %389 = vrcp.f32 %v504_v28 }
  0xbb   :  { %v199_v18 = vor.u32 1.1754944e-38, %v198_v6  ;;  %vm197_vm8 = vcmp.eq.f32.partialorder %v196_v11, 8.507059e+37 }
  0xbc   :  { %v150_v58 = vmul.f32 %v386_v50, %v149_v54 }
  0xbe   :  { %v151_v61 = vadd.f32 %v386_v50, %v150_v58 }
  0xbf   :  { %v388_v60 = vpop.eup %387 }
  0xc0   :  { %v188_v0 = vmul.f32 %v388_v60, %v186_v49  ;;  %v155_v2 = vsel %vm154_vm3, %v386_v50, %v151_v61  ;;  %vm193_vm5 = vweird.f32 %v388_v60  ;;  %v390_v29 = vpop.eup %389  ;;  %v370_v49 = vld [vmem:[#allocation8] sm:$0xff] }
  0xc1   :  { %v160_v3 = vsel %vm157_vm4, %v159_v63, %v155_v2  ;;  %vm194_vm7 = vmor %vm192_vm6, %vm193_vm5  ;;  %v215_v16 = vmul.f32 32.0, %v390_v29  ;;  %vm219_vm9 = vweird.f32 %v390_v29  ;;  %314 = vmatpush.bf16.msra.mxu1 %v370_v49 }
  0xc2   :  { %v189_v4 = vsub.f32 1.0, %v188_v0  ;;  %v161_v5 = vmul.f32 %v160_v3, %v136_v1 }
  0xc3   :  { %v216_v30 = vsub.f32 1.0, %v215_v16 }
  0xc4   :  { %v190_v10 = vmul.f32 %v388_v60, %v189_v4  ;;  %v352_v12 = vclamps-f32 %v161_v5, 1.0 }
  0xc5   :  { %v217_v31 = vmul.f32 %v390_v29, %v216_v30 }
  0xc6   :  { %v191_v14 = vadd.f32 %v388_v60, %v190_v10  ;;  %v204_v17 = vadd.f32 1.0, %v352_v12 }
  0xc7   :  { %v218_v32 = vadd.f32 %v390_v29, %v217_v31 }
  0xc8   :  { %v195_v19 = vsel %vm194_vm7, %v388_v60, %v191_v14  ;;  %v206_v20 = vmul.f32 %v204_v17, %v120_v15  ;;  %v384_v15 = vld [vmem:[%s601_s6] ss:$0 sm:$0xff] }
  0xc9   :  { %v200_v21 = vsel %vm197_vm8, %v199_v18, %v195_v19  ;;  %v220_v33 = vsel %vm219_vm9, %v390_v29, %v218_v32 }
  0xca   :  { %v201_v22 = vmul.f32 %v200_v21, %v176_v8  ;;  %v208_v23 = vsel %vm102_vm0, %v206_v20, 0.0 }
  0xcb   :  { %209 = vadd.xlane.f32.xlu0 %v208_v23 }
  0xcc   :  { %v353_v24 = vclamps-f32 %v201_v22, 1.0 }
  0xce   :  { %v205_v26 = vadd.f32 1.0, %v353_v24 }
  0xd0   :  { %v207_v27 = vmul.f32 %v205_v26, %v121_v25 }
  0xd2   :  { %v211_v7 = vsel %vm102_vm0, %v207_v27, 0.0 }
  0xd3   :  { %212 = vadd.xlane.f32.xlu0 %v211_v7 }
 0x13e   :  { %v210_v34 = vpop.xlane.xlu0 %209 }
 0x13f   :  { %v221_v35 = vmul.f32 %v220_v33, %v210_v34 }
 0x141   :  { %v223_v36 = vsub.f32 %v206_v20, %v221_v35 }
 0x143   :  { %v225_v37 = vmul.f32 %v223_v36, %v223_v36 }
 0x145   :  { %v227_v13 = vsel %vm102_vm0, %v225_v37, 0.0 }
 0x146   :  { %228 = vadd.xlane.f32.xlu1 %v227_v13  ;;  %v213_v38 = vpop.xlane.xlu0 %212 }
 0x147   :  { %v222_v39 = vmul.f32 %v220_v33, %v213_v38 }
 0x149   :  { %v224_v40 = vsub.f32 %v207_v27, %v222_v39 }
 0x14b   :  { %v226_v41 = vmul.f32 %v224_v40, %v224_v40 }
 0x14d   :  { %v230_v42 = vsel %vm102_vm0, %v226_v41, 0.0 }
 0x14e   :  { %231 = vadd.xlane.f32.xlu1 %v230_v42 }
 0x1b9   :  { %v229_v43 = vpop.xlane.xlu1 %228 }
 0x1ba   :  { %v233_v44 = vmul.f32 %v229_v43, %v220_v33 }
 0x1bc   :  { %v235_v45 = vadd.f32 1e-12, %v233_v44 }
 0x1be   :  { %391 = vrsqrt.f32 %v235_v45  ;;  %vm243_vm11 = vweird.f32 %v235_v45 }
 0x1c1   :  { %v232_v47 = vpop.xlane.xlu1 %231 }
 0x1c2   :  { %v234_v48 = vmul.f32 %v232_v47, %v220_v33 }
 0x1c4   :  { %v392_v50 = vpop.eup %391  ;;  %v236_v51 = vadd.f32 1e-12, %v234_v48 }
 0x1c5   :  { %v238_v52 = vmul.f32 %v392_v50, %v235_v45  ;;  %vm244_vm10 = vweird.f32 %v392_v50 }
 0x1c6   :  { %393 = vrsqrt.f32 %v236_v51  ;;  %vm245_vm12 = vmor %vm243_vm11, %vm244_vm10  ;;  %vm253_vm15 = vweird.f32 %v236_v51 }
 0x1c7   :  { %v239_v53 = vmul.f32 %v392_v50, %v238_v52 }
 0x1c9   :  { %v240_v54 = vmul.f32 0.5, %v239_v53 }
 0x1cb   :  { %v241_v55 = vsub.f32 1.5, %v240_v54 }
 0x1cc   :  { %v394_v56 = vpop.eup %393 }
 0x1cd   :  { %v242_v57 = vmul.f32 %v392_v50, %v241_v55  ;;  %v248_v58 = vmul.f32 %v394_v56, %v236_v51  ;;  %vm254_vm13 = vweird.f32 %v394_v56 }
 0x1ce   :  { %vm255_vm1 = vmor %vm253_vm15, %vm254_vm13 }
 0x1cf   :  { %v246_v60 = vsel %vm245_vm12, %v392_v50, %v242_v57  ;;  %v249_v61 = vmul.f32 %v394_v56, %v248_v58 }
 0x1d0   :  { %v257_v63 = vmul.f32 %v246_v60, %v223_v36 }
 0x1d1   :  { %v250_v0 = vmul.f32 0.5, %v249_v61 }
 0x1d2   :  { %v263_v1 = vmul.f32 %v382_v59, %v257_v63 }
 0x1d3   :  { %v251_v2 = vsub.f32 1.5, %v250_v0 }
 0x1d4   :  { %v269_v3 = vadd.f32 %v383_v62, %v263_v1 }
 0x1d5   :  { %v252_v4 = vmul.f32 %v394_v56, %v251_v2 }
 0x1d6   :  { %v271_v5 = vpack.c.bf16 %v269_v3, %v269_v3 }
 0x1d7   :  { %v256_v6 = vsel %vm255_vm1, %v394_v56, %v252_v4 }
 0x1d8   :  { %274 = vst.msk [vmem:[#allocation2] sm:$0xf] %vm273_vm14, %v271_v5  ;;  %v258_v9 = vmul.f32 %v256_v6, %v224_v40 }
 0x1da   :  { %v264_v10 = vmul.f32 %v382_v59, %v258_v9 }
 0x1dc   :  { %v270_v11 = vadd.f32 %v383_v62, %v264_v10 }
 0x1de   :  { %v272_v12 = vpack.c.bf16 %v270_v11, %v270_v11 }
 0x1e0   :  { %275 = vst.msk [vmem:[#allocation2 + $0x4] sm:$0xf] %vm273_vm14, %v272_v12 }
 0x1e7   :  { %v369_v14 = vld [vmem:[#allocation2] sm:$0xff] }
 0x1e8   :  { %366 = vmatmul.msk.bf16.vlgmr.msra.gmra.mxu1 %vm102_vm0, %v369_v14 }
 0x265   :  { %v316_v17 = vpop.f32.mrf.mxu1 }
 0x266   :  { %v317_v18 = vadd.f32 %v384_v15, %v316_v17 }
 0x268   :  { %321 = vst [vmem:[#allocation9] sm:$0xff] %v317_v18 }
 0x26d   :  { %v318_v8 = vpop.f32.mrf.mxu1 }
 0x26e   :  { %v319_v19 = vadd.f32 %v384_v15, %v318_v8 }
 0x270   :  { %322 = vst [vmem:[#allocation9 + $0x8] sm:$0xff] %v319_v19 }
 0x271   :  { %335 = dma.vmem_to_hbm [thread:$0]  %s328_s23, 256, %s330_s26, [#allocation5], %s501_s13, %s501_s13, %s502_s14  }
 0x272   :  { %495 = dma.done.wait [#allocation5], 256  }
 0x273   :  { %496 = vsyncadd [#allocation5], 4294967040 }
 0x274   :  { %340 = vsyncpa [#allocation4], 1 }
 0x275   :  { %341 = vsyncpa [#allocation7], 1 }
 0x276   :  { %342 = vsyncpa [#allocation5], 1 }

</bundles_post_ra>
